<compile_context>
chip_gen: v7x
topology: tpu7x:2x2x1
jax: 0.10.0
libtpu: 0.0.40
codegen_flags: <defaults>
</compile_context>

<pallas_src>
import jax
import jax.numpy as jnp
from jax.experimental import pallas as pl
from jax.experimental.pallas import tpu as pltpu


# ------------------- stage 1 kernel: h = tanh(x @ W1 + b1) --------------------
def hidden_kernel(x_ref, w1_ref, b1_ref, h_ref):
    # x_ref:  (1, P, D) bf16   w1_ref: (1, D, M) bf16   b1_ref: (1, 1, M) f32
    # h_ref:  (1, P, M) bf16
    h = jnp.tanh(
        jnp.dot(x_ref[0], w1_ref[0], preferred_element_type=jnp.float32)
        + b1_ref[0]
    )
    h_ref[0] = h.astype(h_ref.dtype)


def hidden_mlp(x3, w1_3, b1_3):
    """First Linear + Tanh for the 3 branches; tiny, computed once."""
    nb, P, D = x3.shape
    M = w1_3.shape[-1]
    return pl.pallas_call(
        hidden_kernel,
        out_shape=jax.ShapeDtypeStruct((nb, P, M), jnp.bfloat16),
        grid_spec=pltpu.PrefetchScalarGridSpec(
            num_scalar_prefetch=0,
            grid=(nb,),
            in_specs=[
                pl.BlockSpec((1, P, D), lambda i: (i, 0, 0)),
                pl.BlockSpec((1, D, M), lambda i: (i, 0, 0)),
                pl.BlockSpec((1, 1, M), lambda i: (i, 0, 0)),
            ],
            out_specs=pl.BlockSpec((1, P, M), lambda i: (i, 0, 0)),
        ),
        compiler_params=pltpu.CompilerParams(
            dimension_semantics=("parallel",),
        ),
    )(x3.astype(jnp.bfloat16), w1_3.astype(jnp.bfloat16), b1_3)


# ------------- stage 2 kernel: y = h @ W2 + b2, streamed over O ---------------
def prefix_out_kernel(h_ref, w2_ref, b2_ref, o_ref):
    # h_ref:  (1, P, M)  bf16  (branch-resident, no re-DMA across the O loop)
    # w2_ref: (1, M, tO) bf16  (dominant HBM stream)
    # b2_ref: (1, 1, tO) f32
    # o_ref:  (1, P, tO) bf16
    y = (
        jnp.dot(h_ref[0], w2_ref[0], preferred_element_type=jnp.float32)
        + b2_ref[0]
    )
    o_ref[0] = y.astype(o_ref.dtype)


def _choose_o_tile(O, target=4096):
    """Largest multiple-of-128 divisor of O that is <= target (O itself if
    small or not 128-divisible)."""
    if O <= target or O % 128 != 0:
        # TODO(synk): non-128-multiple O falls back to a single full-O tile;
        # for very large non-aligned configs this may exceed the VMEM budget.
        return O
    t = (target // 128) * 128
    while t >= 128:
        if O % t == 0:
            return t
        t -= 128
    return O


def prefix_out(h3, w2_3, b2_3, *, o_tile_target=4096):
    """Second Linear for the 3 branches via one pallas_call.

    h3:   (3, P, M) bf16      w2_3: (3, M, O) f32/bf16      b2_3: (3, 1, O) f32
    returns (3, P, O) bf16,   O = 2 * n_layer * n_embd
    """
    nb, P, M = h3.shape
    O = w2_3.shape[-1]
    tO = _choose_o_tile(O, o_tile_target)
    n_o = O // tO

    # Explicit scoped-VMEM budget: double-buffered W2 / b2 / out tiles plus the
    # resident h, with ~2x headroom, capped safely below v7x's 64 MiB physical.
    working_set = (
        2 * (M * tO * 2)      # W2 bf16 tiles, double-buffered
        + 2 * (P * tO * 2)    # output bf16 tiles, double-buffered
        + 2 * (1 * tO * 4)    # b2 f32 tiles, double-buffered
        + 2 * (P * M * 2)     # resident h (bf16)
    )
    vmem_limit = int(min(48 << 20, max(2 * working_set + (2 << 20), 16 << 20)))

    return pl.pallas_call(
        prefix_out_kernel,
        out_shape=jax.ShapeDtypeStruct((nb, P, O), jnp.bfloat16),
        grid_spec=pltpu.PrefetchScalarGridSpec(
            num_scalar_prefetch=0,
            grid=(nb, n_o),
            in_specs=[
                # branch-resident LHS: block index depends only on the branch
                # axis, so Pallas does not re-DMA it across the O loop.
                pl.BlockSpec((1, P, M), lambda i, o: (i, 0, 0)),
                # streamed second-layer weight / bias tiles.
                pl.BlockSpec((1, M, tO), lambda i, o: (i, 0, o)),
                pl.BlockSpec((1, 1, tO), lambda i, o: (i, 0, o)),
            ],
            out_specs=pl.BlockSpec((1, P, tO), lambda i, o: (i, 0, o)),
        ),
        compiler_params=pltpu.CompilerParams(
            # Force any megacore split onto the (balanced) O axis rather than
            # the 3-branch axis; there is no carried state so this is safe.
            dimension_semantics=("arbitrary", "parallel"),
            vmem_limit_bytes=vmem_limit,
        ),
    )(h3, w2_3.astype(jnp.bfloat16), b2_3)


# --------------------------- model-level wrapper ------------------------------
class PrefixTuningParams:
    """Deterministic synthetic parameters matching the PyTorch module shapes."""

    def __init__(self, key, *, preseqlen, n_embd, mid_dim, n_layer, n_head):
        self.preseqlen = preseqlen
        self.n_embd = n_embd
        self.mid_dim = mid_dim
        self.match_n_layer = n_layer
        self.match_n_head = n_head
        self.match_n_embd = n_embd // n_head
        out_dim = n_layer * 2 * n_embd

        keys = jax.random.split(key, 16)
        k = iter(keys)

        # fixed random prefix token ids (as in the PyTorch __init__)
        self.input_tokens = jax.random.randint(
            next(k), (preseqlen,), 0, preseqlen, dtype=jnp.int32
        )

        def emb(kk):
            return 0.02 * jax.random.normal(kk, (preseqlen, n_embd), jnp.float32)

        def lin(kk, din, dout):
            kw, kb = jax.random.split(kk)
            w = 0.02 * jax.random.normal(kw, (din, dout), jnp.float32)   # (in, out)
            b = 0.02 * jax.random.normal(kb, (1, dout), jnp.float32)     # nonzero bias
            return w, b

        # three branches: decoder-self-attn ("wte"), cross-attn ("wte_dec"),
        # encoder ("wte_enc") -- each with its own embedding + 2-layer MLP.
        self.wte = [emb(next(k)) for _ in range(3)]
        self.w1, self.b1, self.w2, self.b2 = [], [], [], []
        for _ in range(3):
            w1, b1 = lin(next(k), n_embd, mid_dim)
            w2, b2 = lin(next(k), mid_dim, out_dim)
            self.w1.append(w1)
            self.b1.append(b1)
            self.w2.append(w2)
            self.b2.append(b2)


def _stacked_params(params):
    toks = params.input_tokens
    x3 = jnp.stack([params.wte[i][toks] for i in range(3)], axis=0)   # (3, P, D)
    w1_3 = jnp.stack(params.w1, axis=0)                               # (3, D, M)
    b1_3 = jnp.stack(params.b1, axis=0)                               # (3, 1, M)
    w2_3 = jnp.stack(params.w2, axis=0)                               # (3, M, O)
    b2_3 = jnp.stack(params.b2, axis=0)                               # (3, 1, O)
    return x3, w1_3, b1_3, w2_3, b2_3


def compute_prefix_mlp(params):
    """Batch-independent MLP: embedding gather + 2-layer MLP (Pallas).
    Returns y3 of shape (3, P, 2*L*D) in bf16."""
    x3, w1_3, b1_3, w2_3, b2_3 = _stacked_params(params)
    h3 = hidden_mlp(x3, w1_3, b1_3)          # (3, P, M) bf16
    return prefix_out(h3, w2_3, b2_3)        # (3, P, O) bf16


def compute_prefix_kv(params, y3=None):
    """Hoisted batch-free K/V layout: (3, 2L, H, P, Hd).

    Matches permute([2,0,3,1,4]) of (b, P, 2L, H, Hd) with the batch dim
    removed (all batch rows are identical in eval mode)."""
    P = params.preseqlen
    L = params.match_n_layer
    H = params.match_n_head
    Hd = params.match_n_embd
    if y3 is None:
        y3 = compute_prefix_mlp(params)
    kv = y3.reshape(3, P, 2 * L, H, Hd)
    kv = jnp.transpose(kv, (0, 2, 3, 1, 4))   # (3, 2L, H, P, Hd)
    return kv, y3


def get_prompt(params, bsz, kv3=None):
    """JAX/Pallas equivalent of PrefixTuningModel.get_prompt (sample_size=1).
    Only a cheap batch broadcast happens per call; all compute + layout work
    is hoisted into compute_prefix_kv."""
    P = params.preseqlen
    L = params.match_n_layer
    H = params.match_n_head
    Hd = params.match_n_embd

    if kv3 is None:
        kv3, _ = compute_prefix_kv(params)

    def branch_kv(kv, b):
        # (2L, H, P, Hd) -> (2L, b, H, P, Hd), per-layer (2, b, H, P, Hd) chunks
        y = jnp.broadcast_to(kv[:, None], (2 * L, b, H, P, Hd))
        return [y[2 * i: 2 * i + 2] for i in range(L)]

    dec_self = branch_kv(kv3[0], bsz)   # "decoder_prompt"          (wte branch)
    cross = branch_kv(kv3[1], bsz)      # "cross_attention_prompt"  (wte_dec branch)
    enc = branch_kv(kv3[2], bsz)        # "encoder_prompt"          (wte_enc, old_bsz == bsz)

    result = []
    for i in range(L):
        result.append(
            {
                "decoder_prompt": {
                    "prev_key": dec_self[i][0],
                    "prev_value": dec_self[i][1],
                    "prev_key_padding_mask": jnp.zeros((bsz, P), jnp.bool_),
                },
                "cross_attention_prompt": {
                    "prev_key": cross[i][0],
                    "prev_value": cross[i][1],
                    "prev_key_padding_mask": jnp.zeros((bsz, P), jnp.bool_),
                },
                "encoder_prompt": {
                    "prev_key": enc[i][0],
                    "prev_value": enc[i][1],
                    "prev_key_padding_mask": jnp.zeros((bsz, P), jnp.bool_),
                },
            }
        )
    return result


def reference_mlp(x3, w1_3, b1_3, w2_3, b2_3):
    # Mirrors the kernel numerics: bf16-rounded matmul inputs and hidden,
    # f32 accumulation, f32 bias add / tanh.
    xb = x3.astype(jnp.bfloat16).astype(jnp.float32)
    w1b = w1_3.astype(jnp.bfloat16).astype(jnp.float32)
    w2b = w2_3.astype(jnp.bfloat16).astype(jnp.float32)
    h = jnp.tanh(
        jnp.einsum("bpd,bdm->bpm", xb, w1b, preferred_element_type=jnp.float32)
        + b1_3
    )
    hb = h.astype(jnp.bfloat16).astype(jnp.float32)
    return (
        jnp.einsum("bpm,bmo->bpo", hb, w2b, preferred_element_type=jnp.float32)
        + b2_3
    )


# --------------------------------- main ---------------------------------------
if __name__ == "__main__":
    # small shapes consistent with the module structure
    preseqlen = 8      # prefix length P
    n_embd = 32        # d_model
    mid_dim = 64
    n_layer = 2        # decoder_layers
    n_head = 4         # decoder_attention_heads  -> head_dim = 8
    bsz = 2
    seq = 8

    key = jax.random.PRNGKey(0)
    kp, kin = jax.random.split(key)
    params = PrefixTuningParams(
        kp,
        preseqlen=preseqlen,
        n_embd=n_embd,
        mid_dim=mid_dim,
        n_layer=n_layer,
        n_head=n_head,
    )

    # the forward only uses batch['input_ids'].shape[0]
    input_ids = jax.random.randint(kin, (bsz, seq), 0, 100, dtype=jnp.int32)

    # batch-independent prefix (MLP via Pallas + per-layer layout) hoisted
    # out of the per-call path.
    kv3, y3 = compute_prefix_kv(params)
    jax.block_until_ready((kv3, y3))

    past_prompt = get_prompt(params, bsz=input_ids.shape[0], kv3=kv3)

    # correctness check of the Pallas hot path against a pure-JAX reference
    x3, w1_3, b1_3, w2_3, b2_3 = _stacked_params(params)
    ref = reference_mlp(x3, w1_3, b1_3, w2_3, b2_3)
    y3f = y3.astype(jnp.float32)
    assert jnp.allclose(y3f, ref, atol=1e-3, rtol=2e-2), (
        float(jnp.max(jnp.abs(y3f - ref)))
    )

    # sanity on the structure shapes (matches permute([2,0,3,1,4]).split(2))
    k0 = past_prompt[0]["decoder_prompt"]["prev_key"]
    assert k0.shape == (bsz, n_head, preseqlen, n_embd // n_head)
    assert past_prompt[0]["encoder_prompt"]["prev_value"].shape == (
        bsz, n_head, preseqlen, n_embd // n_head
    )
    assert len(past_prompt) == n_layer
    jax.block_until_ready(k0)

    print("KERNEL_OK")
</pallas_src>

<mosaic_0001>
module attributes {stable_mosaic.version = 11 : i64} {
  func.func @hidden_kernel(%arg0: i32, %arg1: memref<1x8x32xbf16, #tpu.memory_space<vmem>>, %arg2: memref<1x32x64xbf16, #tpu.memory_space<vmem>>, %arg3: memref<1x1x64xf32, #tpu.memory_space<vmem>>, %arg4: memref<1x8x64xbf16, #tpu.memory_space<vmem>>) attributes {dimension_semantics = [#tpu.dimension_semantics<parallel>], iteration_bounds = array<i64: 3>, scalar_prefetch = 0 : i64, scratch_operands = 0 : i64, tpu.core_type = #tpu.core_type<tc>, window_params = [{transform_indices = @transform_0, window_bounds = array<i64: 1, 8, 32>}, {transform_indices = @transform_1, window_bounds = array<i64: 1, 32, 64>}, {transform_indices = @transform_2, window_bounds = array<i64: 1, 1, 64>}, {transform_indices = @transform_3, window_bounds = array<i64: 1, 8, 64>}]} {
    %c0 = arith.constant 0 : index
    %c0_0 = arith.constant 0 : index
    %c0_1 = arith.constant 0 : index
    %0 = vector.load %arg1[%c0, %c0_0, %c0_1] : memref<1x8x32xbf16, #tpu.memory_space<vmem>>, vector<1x8x32xbf16>
    %1 = vector.shape_cast %0 : vector<1x8x32xbf16> to vector<8x32xbf16>
    %c0_2 = arith.constant 0 : index
    %c0_3 = arith.constant 0 : index
    %c0_4 = arith.constant 0 : index
    %2 = vector.load %arg2[%c0_2, %c0_3, %c0_4] : memref<1x32x64xbf16, #tpu.memory_space<vmem>>, vector<1x32x64xbf16>
    %3 = vector.shape_cast %2 : vector<1x32x64xbf16> to vector<32x64xbf16>
    %cst = arith.constant dense<0.000000e+00> : vector<8x64xf32>
    %4 = tpu.matmul %1, %3, %cst {dimension_numbers = #tpu.dot_dimension_numbers<[1], [0], [0], [1], [0, 0, 1, 1], [], []>} : vector<8x32xbf16>, vector<32x64xbf16>, vector<8x64xf32> -> vector<8x64xf32>
    %c0_5 = arith.constant 0 : index
    %c0_6 = arith.constant 0 : index
    %c0_7 = arith.constant 0 : index
    %5 = vector.load %arg3[%c0_5, %c0_6, %c0_7] : memref<1x1x64xf32, #tpu.memory_space<vmem>>, vector<1x1x64xf32>
    %6 = vector.shape_cast %5 : vector<1x1x64xf32> to vector<1x64xf32>
    %7 = vector.broadcast %6 : vector<1x64xf32> to vector<8x64xf32>
    %8 = arith.addf %4, %7 : vector<8x64xf32>
    %9 = math.tanh %8 : vector<8x64xf32>
    %10 = arith.truncf %9 : vector<8x64xf32> to vector<8x64xbf16>
    %c0_8 = arith.constant 0 : index
    %c0_9 = arith.constant 0 : index
    %c0_10 = arith.constant 0 : index
    %11 = vector.load %arg4[%c0_8, %c0_9, %c0_10] : memref<1x8x64xbf16, #tpu.memory_space<vmem>>, vector<1x8x64xbf16>
    %12 = vector.shape_cast %11 : vector<1x8x64xbf16> to vector<8x64xbf16>
    %13 = vector.shape_cast %10 : vector<8x64xbf16> to vector<1x8x64xbf16>
    tpu.vector_store %arg4[%c0_8, %c0_9, %c0_10], %13 {strides = array<i32>} : memref<1x8x64xbf16, #tpu.memory_space<vmem>>, vector<1x8x64xbf16>,
    return
  }
  func.func @transform_0(%arg0: i32) -> (i32, i32, i32) {
    %c0_i32 = arith.constant 0 : i32
    %c0_i32_0 = arith.constant 0 : i32
    %c0_i32_1 = arith.constant 0 : i32
    return %arg0, %c0_i32, %c0_i32_0 : i32, i32, i32
  }
  func.func @transform_1(%arg0: i32) -> (i32, i32, i32) {
    %c0_i32 = arith.constant 0 : i32
    %c0_i32_0 = arith.constant 0 : i32
    %c0_i32_1 = arith.constant 0 : i32
    return %arg0, %c0_i32, %c0_i32_0 : i32, i32, i32
  }
  func.func @transform_2(%arg0: i32) -> (i32, i32, i32) {
    %c0_i32 = arith.constant 0 : i32
    %c0_i32_0 = arith.constant 0 : i32
    %c0_i32_1 = arith.constant 0 : i32
    return %arg0, %c0_i32, %c0_i32_0 : i32, i32, i32
  }
  func.func @transform_3(%arg0: i32) -> (i32, i32, i32) {
    %c0_i32 = arith.constant 0 : i32
    %c0_i32_0 = arith.constant 0 : i32
    %c0_i32_1 = arith.constant 0 : i32
    return %arg0, %c0_i32, %c0_i32_0 : i32, i32, i32
  }
}

</mosaic_0001>

<bundles_post_ra>
// kernel: tpu_custom_call.1
= control target key start
LH: loop header
LB: loop body
LE: loop exit
PB: predicated region body
PF: predicated region fallthrough
CT: control target
= control target key end

     0   :  { %8 = vsyncpa [#allocation3], 0  ;;  %s898_s0 = inlined_call_operand.hbm [shape: bf16[3,8,32], index: 0, kind: input, shape index: {}]   ;;  %s899_s1 = inlined_call_operand.hbm [shape: bf16[3,32,64], index: 1, kind: input, shape index: {}]   ;;  %s900_s2 = inlined_call_operand.vmem [shape: f32[3,1,64], index: 2, kind: input, shape index: {}]   ;;  %s901_s3 = inlined_call_operand.hbm [shape: bf16[3,8,64], index: 3, kind: output, shape index: {}]  }
   0x1   :  { %10 = vsyncpa [#allocation3 + $0x1], 0 }
   0x2   :  { %11 = vsyncpa [#allocation6], 0 }
   0x3   :  { %13 = vsyncpa [#allocation6 + $0x1], 0 }
   0x4   :  { %14 = vsyncpa [#allocation4], 0 }
   0x5   :  { %16 = vsyncpa [#allocation4 + $0x1], 0  ;;  %s679_s12 = smov 0   ;;  %s681_s13 = smov 0  }
   0x6   :  { %s683_s14 = smov 0   ;;  %s685_s15 = smov 0  }
   0x7 LB: > { %s700_s16 = sadd.s32 4294967295, %s650_s15   ;;  %s429_s17 = sadd.s32 4294967294, %s650_s15   ;;  %s650_s15 = sphi %s685_s15, %s918_s15   ;;  %s646_s14 = sphi %s683_s14, %s917_s14   ;;  %s642_s13 = sphi %s681_s13, %s916_s13   ;;  %s638_s12 = sphi %s679_s12, %s915_s12  }
   0x8   : > { %s704_s18 = sadd.s32 1, %s650_s15   ;;  %s29_s19 = sadd.s32 1, %s646_s14 }
   0x9   : > { %s26_s20 = ssub.s32 %s650_s15, %s704_s18  ;;  %p36_p0 = scmp.ne.s32.totalorder %s646_s14, %s642_s13 }
   0xa   : > { %p27_p1 = scmp.eq.s32.totalorder %s26_s20, 0  ;;  %p37_p2 = scmp.eq.s32.totalorder %s650_s15, 0 }
   0xb   : > { %p42_p3 = scmp.ne.s32.totalorder %s642_s13, %s638_s12  ;;  %p43_p4 = scmp.eq.s32.totalorder %s700_s16, 0 }
   0xc   : > { %s716_s21 = scalar_select %p27_p1, %s646_s14, %s29_s19  }
   0xd   : > { %p718_p5 = por %p37_p2, %p36_p0  ;;  %p722_p6 = por %p43_p4, %p42_p3 }
   0xe   : > { %p118_p7 = scmp.eq.s32.totalorder %s700_s16, 2  ;;  %p124_p8 = scmp.eq.s32.totalorder %s429_s17, 2 }
   0xf   : > { %s905_s23 = scalar_select %p722_p6, 1, 0 }
  0x10   : > { %p478_p9 = scmp.lt.s32.totalorder %s650_s15, 3  ;;  %p728_p10 = por %p118_p7, %p36_p0 }
  0x11   : > { %p732_p11 = por %p124_p8, %p42_p3  ;;  %s737_s26 = sand.u32 1, %s646_s14  }
  0x12   : > { %s906_s24 = scalar_select %p728_p10, 1, 0 }
  0x13   : > { %s907_s25 = scalar_select %p732_p11, 1, 0 }
  0x14   : > { %s433_s27 = sshll.u32 %s650_s15, 6  ;;  %s432_s28 = sshll.u32 %s737_s26, 2 }
  0x15   : > { %s744_s4 = scalar_lea.hbm %s898_s0, %s433_s27  ;;  %s148_s5 = scalar_lea.vmem [#allocation2], %s432_s28 }
  0x16   : > { %s155_s6 = sshll.u32 %s148_s5, 4  ;;  %p748_p12 = pnand %p478_p9, %p718_p5  ;;  %s752_s6 = int_to_ptr.vmem [resolvable:$true] %s155_s6 }
  0x17   : > { %s145_s8 = scalar_lea.sflag [#allocation3], %s737_s26  ;;  %s520_s9 = scalar_lea.hbm %s744_s4, 64 }
  0x18   : > { %p521_p1 = scmp.ne.s32.totalorder %s744_s4, %s520_s9  ;;  %p522_p2 = pneg %p748_p12 }
  0x19   : > { %s525_s17 = scalar_lea.hbm %s898_s0, 192  ;;  %p526_p5 = scmp.lt.u32.totalorder %s744_s4, %s898_s0 }
  0x1a   : > { %p523_p3 = pnand %p522_p2, %p521_p1  ;;  %p527_p7 = scmp.lt.u32.totalorder %s525_s17, %s520_s9 }
  0x1b   : > { %p529_p9 = scmp.lt.u32.totalorder %s520_s9, %s744_s4 }
  0x1c   : > { %p524_p4 = pneg %p523_p3  ;;  %p528_p8 = por %p527_p7, %p526_p5 }
  0x1e   : > { %p530_p13 = por %p529_p9, %p528_p8 }
  0x20   : > { %p531_p0 = pnand %p530_p13, %p524_p4 }
  0x22   : > { %534 = shalt.err (!%p531_p0)
}
  0x23   : > { %s535_s22 = scalar_lea.vmem %s752_s6, 64  ;;  %s652_s27 = smov [#allocation2]  }
  0x24   : > { %p536_p1 = scmp.ne.s32.totalorder %s752_s6, %s535_s22  ;;  %s540_s28 = sshll.u32 %s652_s27, 4  ;;  %s541_s28 = int_to_ptr.vmem [resolvable:$false] %s540_s28 }
  0x25   : > { %s542_s29 = scalar_lea.vmem %s541_s28, 128  ;;  %p543_p10 = scmp.lt.s32.totalorder %s752_s6, %s541_s28 }
  0x26   : > { %p538_p3 = pnand %p536_p1, %p522_p2  ;;  %p544_p5 = scmp.lt.s32.totalorder %s542_s29, %s535_s22 }
  0x28   : > { %p539_p11 = pneg %p538_p3  ;;  %p545_p7 = por %p544_p5, %p543_p10 }
  0x2a   : > { %p546_p8 = pnand %p545_p7, %p539_p11 }
  0x2c   : > { %549 = shalt.err (!%p546_p8)
}
  0x2d   : > { %470 = dma.hbm_to_vmem [thread:$0]  (!%p748_p12), %s744_s4, 64, %s752_s6, %s145_s8  }
  0x2e   : > { %p909_p13 = scmp.lt.s32.totalorder %s650_s15, 4  ;;  %p910_p0 = scmp.ge.s32.totalorder %s650_s15, 1 }
  0x2f   : > { %s434_s5 = sshll.u32 %s737_s26, 4  ;;  %s449_s9 = sshll.u32 %s650_s15, 8 }
  0x30   : > { %p786_p4 = pnand %p910_p0, %p909_p13  ;;  %s795_s17 = scalar_lea.hbm %s899_s1, %s449_s9 }
  0x31   : > { %s166_s19 = scalar_lea.vmem [#allocation5], %s434_s5  ;;  %s163_s4 = scalar_lea.sflag [#allocation6], %s737_s26 }
  0x32   : > { %s173_s20 = sshll.u32 %s166_s19, 4  ;;  %s550_s6 = scalar_lea.hbm %s795_s17, 256  ;;  %s797_s20 = int_to_ptr.vmem [resolvable:$true] %s173_s20 }
  0x33   : > { %p551_p10 = scmp.ne.s32.totalorder %s795_s17, %s550_s6  ;;  %s555_s27 = scalar_lea.hbm %s899_s1, 768 }
  0x34   : > { %p556_p1 = scmp.lt.u32.totalorder %s795_s17, %s899_s1  ;;  %p557_p3 = scmp.lt.u32.totalorder %s555_s27, %s550_s6 }
  0x35   : > { %p553_p11 = pnand %p551_p10, %p522_p2  ;;  %p559_p7 = scmp.lt.u32.totalorder %s550_s6, %s795_s17 }
  0x36   : > { %p558_p5 = por %p557_p3, %p556_p1 }
  0x37   : > { %p554_p9 = pneg %p553_p11 }
  0x38   : > { %p560_p8 = por %p559_p7, %p558_p5 }
  0x3a   : > { %p561_p13 = pnand %p560_p8, %p554_p9 }
  0x3c   : > { %564 = shalt.err (!%p561_p13)
}
  0x3d   : > { %s565_s5 = scalar_lea.vmem %s797_s20, 256  ;;  %s653_s9 = smov [#allocation5]  }
  0x3e   : > { %p566_p0 = scmp.ne.s32.totalorder %s797_s20, %s565_s5  ;;  %s570_s10 = sshll.u32 %s653_s9, 4  ;;  %s571_s10 = int_to_ptr.vmem [resolvable:$false] %s570_s10 }
  0x3f   : > { %s572_s11 = scalar_lea.vmem %s571_s10, 512  ;;  %p573_p6 = scmp.lt.s32.totalorder %s797_s20, %s571_s10 }
  0x40   : > { %p568_p10 = pnand %p566_p0, %p522_p2  ;;  %p574_p1 = scmp.lt.s32.totalorder %s572_s11, %s565_s5 }
  0x42   : > { %p569_p11 = pneg %p568_p10  ;;  %p575_p3 = por %p574_p1, %p573_p6 }
  0x44   : > { %p576_p5 = pnand %p575_p3, %p569_p11 }
  0x46   : > { %579 = shalt.err (!%p576_p5)
}
  0x47   : > { %s654_s19 = smov 64   ;;  %s655_s6 = smov 4  }
  0x48   : > { %473 = dma.hbm_to_vmem [thread:$0]  (!%p748_p12), %s795_s17, 256, %s797_s20, %s163_s4, %s654_s19, %s654_s19, %s655_s6  }
  0x49   : > { %191 = sbr.rel (%p786_p4) target bundleno = 334 (0x14e), region = 32  ;;  %s828_s8 = sand.u32 (!%p786_p4), 1, %s642_s13  }
  0x4a   : > { %s438_s22 = sshll.u32 (!%p786_p4), %s828_s8, 2  ;;  %s194_s27 = scalar_lea.sflag (!%p786_p4), [#allocation3], %s828_s8 }
  0x4b   : > { %s197_s28 = scalar_lea.vmem (!%p786_p4), [#allocation2], %s438_s22  ;;  %p912_p6 = scmp.ne.s32.totalorder (!%p786_p4), %s905_s23, 0 }
  0x50   : > { %625 = dma.done.wait (%p912_p6), %s194_s27, 64  }
  0x51   : > { %627 = vsyncadd (%p912_p6), %s194_s27, 4294967232  ;;  %s439_s26 = sshll.u32 %s828_s8, 4  ;;  %s203_s7 = scalar_lea.sflag [#allocation6], %s828_s8 }
  0x52   : > { %s206_s30 = scalar_lea.vmem [#allocation5], %s439_s26 }
  0x53   : > { %629 = dma.done.wait (%p912_p6), %s203_s7, 256  }
  0x54   : > { %631 = vsyncadd (%p912_p6), %s203_s7, 4294967040  ;;  %v656_v0 = vmov 0.0   ;;  %vm657_vm0 = vmmov 0   ;;  %v516_v1 = vld [vmem:[%s206_s30] sm:$0xff]   ;;  %v517_v2 = vld [vmem:[%s206_s30 + $0x8] sm:$0xff]   ;;  %vm265_vm1 = vcmask 261120  }
  0x55   : > { %453 = vmatprep.subr.bf16.mxu0 %v656_v0  ;;  %457 = vmatprep.mubr.msk.bf16.mxu0 %vm657_vm0, %v656_v0  ;;  %v241_v3 = vld [vmem:[%s197_s28] sm:$0xf]  ;;  %p237_p12 = scmp.lt.s32.totalorder %s700_s16, 2  ;;  %s446_s29 = sshll.u32 %s700_s16, 6  ;;  %vm311_vm2 = vcmask 519168  }
  0x56   : > { %454 = vmatpush3.bf16.msra.mxu0 %v516_v1  ;;  %s236_s5 = scalar_lea.vmem [#allocation7], %s438_s22  ;;  %s855_s19 = scalar_lea.hbm %s901_s3, %s446_s29 }
  0x57   : > { %455 = vmatprep.subr.bf16.mxu0 %v656_v0  ;;  %s238_s17 = scalar_select %p237_p12, %s700_s16, 2 }
  0x58   : > { %s327_s9 = sshll.u32 %s236_s5, 4  ;;  %s314_s6 = scalar_lea.sflag [#allocation4], %s828_s8  ;;  %s857_s9 = int_to_ptr.vmem [resolvable:$true] %s327_s9 }
  0x59   : > { %s239_s4 = scalar_lea.vmem %s900_s2, %s238_s17  ;;  %s580_s27 = scalar_lea.vmem %s857_s9, 64 }
  0x5a   : > { %456 = vmatpush3.bf16.msra.mxu0 %v517_v2  ;;  %v441_v4 = vld [vmem:[%s239_s4] ss:$0 sm:$0xff]  ;;  %p581_p2 = scmp.ne.s32.totalorder %s857_s9, %s580_s27  ;;  %p913_p4 = scmp.ne.s32.totalorder %s906_s24, 0 }
  0x5b   : > { %s658_s16 = smov [#allocation7]  }
  0x5c   : > { %p582_p9 = pnand %p581_p2, %p913_p4  ;;  %s584_s22 = sshll.u32 %s658_s16, 4  ;;  %s585_s22 = int_to_ptr.vmem [resolvable:$false] %s584_s22 }
  0x5d   : > { %458 = vmatmul.mubr.msk.bf16.vlgmr.msra.gmra.mrb[0].mxu0 %vm265_vm1, %v241_v3  ;;  %s586_s28 = scalar_lea.vmem %s585_s22, 128  ;;  %p587_p8 = scmp.lt.s32.totalorder %s857_s9, %s585_s22 }
  0x5e   : > { %p583_p7 = pneg %p582_p9  ;;  %p588_p13 = scmp.lt.s32.totalorder %s586_s28, %s580_s27 }
  0x60   : > { %p589_p0 = por %p588_p13, %p587_p8 }
  0x62   : > { %p590_p10 = pnand %p589_p0, %p583_p7 }
 0x130   : > { %v303_v5 = vpop.f32.mrb[0].mxu0 }
 0x131   : > { %v304_v6 = vadd.f32 %v441_v4, %v303_v5  ;;  %v459_v7 = vpop.f32.mrb[1].mxu0 }
 0x132   : > { %v306_v8 = vpop.f32.mrb[2].mxu0 }
 0x133   : > { %518 = vtanh.f32 %v304_v6  ;;  %v460_v9 = vpop.f32.mrb[3].mxu0 }
 0x13d   : > { %v519_v10 = vpop.eup %518 }
 0x13e   : > { %v310_v11 = vpack.c.bf16 %v519_v10, %v519_v10 }
 0x140   : > { %312 = vst.msk [vmem:[%s236_s5] sm:$0xf] %vm311_vm2, %v310_v11 }
 0x141   : > { %593 = shalt.err (!%p590_p10)
}
 0x142   : > { %s594_s8 = scalar_lea.hbm %s855_s19, 64  ;;  %s598_s30 = scalar_lea.hbm %s901_s3, 192 }
 0x143   : > { %p595_p11 = scmp.ne.s32.totalorder %s855_s19, %s594_s8  ;;  %p599_p5 = scmp.lt.u32.totalorder %s855_s19, %s901_s3 }
 0x144   : > { %p600_p6 = scmp.lt.u32.totalorder %s598_s30, %s594_s8  ;;  %p602_p2 = scmp.lt.u32.totalorder %s594_s8, %s855_s19 }
 0x145   : > { %p596_p1 = pnand %p595_p11, %p913_p4 }
 0x146   : > { %p601_p12 = por %p600_p6, %p599_p5 }
 0x147   : > { %p597_p3 = pneg %p596_p1 }
 0x148   : > { %p603_p9 = por %p602_p2, %p601_p12 }
 0x14a   : > { %p604_p7 = pnand %p603_p9, %p597_p3 }
 0x14c   : > { %607 = shalt.err (!%p604_p7)
}
 0x14d   : > { %465 = dma.vmem_to_hbm [thread:$0]  (%p913_p4), %s857_s9, 64, %s855_s19, %s314_s6  }
 0x14e PF: > { %p479_p8 = scmp.ge.s32.totalorder %s650_s15, 2  ;;  %s339_s20 = sand.u32 1, %s638_s12  }
 0x14f   : > { %p914_p13 = scmp.ne.s32.totalorder %s907_s25, 0  ;;  %s340_s4 = scalar_lea.sflag [#allocation4], %s339_s20 }
 0x151   : > { %p475_p0 = pnand %p479_p8, %p914_p13 }
 0x153   : > { %633 = dma.done.wait (!%p475_p0), %s340_s4, 64  }
 0x154   : > { %635 = vsyncadd (!%p475_p0), %s340_s4, 4294967232  ;;  %p19_p10 = scmp.ge.s32.totalorder %s704_s18, 5   ;;  %s915_s12 = smov %s642_s13 }
 0x155   : > { %s916_s13 = smov %s646_s14  ;;  %s917_s14 = smov %s716_s21 }
 0x156   : > { %s918_s15 = smov %s704_s18  ;;  %21 = sbr.rel (!%p19_p10) target bundleno = 7 (0x7), region = 93 }
 0x15d   :  { %345 = vsyncpa [#allocation3], 1 }
 0x15e   :  { %347 = vsyncpa [#allocation3 + $0x1], 1 }
 0x15f   :  { %348 = vsyncpa [#allocation6], 1 }
 0x160   :  { %350 = vsyncpa [#allocation6 + $0x1], 1 }
 0x161   :  { %351 = vsyncpa [#allocation4], 1 }
 0x162   :  { %353 = vsyncpa [#allocation4 + $0x1], 1 }

</bundles_post_ra>
